<compile_context>
chip_gen: v7x
topology: tpu7x:2x2x1
jax: 0.10.0
libtpu: 0.0.40
codegen_flags: <defaults>
</compile_context>

<pallas_src>
import jax
import jax.numpy as jnp
from jax.experimental import pallas as pl
from jax.experimental.pallas import tpu as pltpu

_C_PAD = 8  # coordinate axis (x, y) padded to one sublane tile; rows 2..7 are zero


def _make_deform_kernel(tau: float):
    def kernel(sig_ref, x_ref, p_ref, out_ref):
        neg_inv_sigma = sig_ref[0]      # scalar -1/sigmaV2 (SMEM)
        x_cm = x_ref[...]               # (bt, 8, P) coord-major landmarks (rows 2..7 = 0)
        p_cm = p_ref[...]               # (bt, 8, P) coord-major padded momentum

        def step(xc):
            # Column vectors via one small (8, P) -> (P, 8) XLU transpose; rows come
            # straight from the coord-major layout.  Direct distance form (no Gram
            # matmul, no clamp, no cancellation).
            xt = jnp.transpose(xc, (0, 2, 1))                 # (bt, P, 8)
            d0 = xt[:, :, 0:1] - xc[:, 0:1, :]                # (bt, P, P)
            d1 = xt[:, :, 1:2] - xc[:, 1:2, :]                # (bt, P, P)
            w = jnp.exp((d0 * d0 + d1 * d1) * neg_inv_sigma)  # (bt, P, P)  EUP-bound
            # K is bit-exactly symmetric here, so contract K on its leading point
            # index: plain (8, P) @ (P, P) MXU matmul, no transposed operand.
            dp = jnp.einsum('bcj,bji->bci', p_cm, w,
                            preferred_element_type=jnp.float32)
            return xc + tau * dp

        # TODO(synk): for very large n_pt (P^2 temps exceeding the VMEM budget even at
        # bt=1), block the kernel matrix over columns flash-style instead of
        # materializing the full (P, P) slab.
        out_ref[...] = step(step(x_cm))

    return kernel


def _vmem_capacity_bytes():
    try:
        info = pltpu.get_tpu_info()
        cap = getattr(info, "vmem_capacity_bytes", None)
        if cap:
            return int(cap)
    except Exception:
        pass
    return 64 << 20  # conservative (v7x-sized) fallback


def _pick_b_tile(B, P, vmem_limit_bytes, num_cores):
    """Largest divisor of B whose live (P,P) f32 temporaries fit the VMEM budget."""
    temp_budget = max(vmem_limit_bytes - (8 << 20), 4 << 20)  # leave room for blocks
    per_batch = 6 * P * P * 4                                 # ~6 live (P,P) f32 temps
    bt_max = int(max(1, min(B, temp_budget // per_batch)))
    divisors = [d for d in range(1, bt_max + 1) if B % d == 0]
    if num_cores > 1 and B >= num_cores:
        # keep the grid length a multiple of the core count (megacore balance)
        even = [d for d in divisors if (B // d) % num_cores == 0]
        if even:
            return max(even)
    return max(divisors)


def single_curve_deform(momentum, source_init, target_init, sigmaV2, n_T=3):
    """Pallas implementation of SingleCurveDeformLayer.forward.

    momentum:    (B, n_momentum, 2)
    source_init: (B, n_src, 2)
    target_init: (B, n_tgt, 2)
    sigmaV2:     scalar
    returns:     (B, n_src + n_tgt - n_momentum, 2)
    """
    momentum = jnp.asarray(momentum, jnp.float32)
    source_init = jnp.asarray(source_init, jnp.float32)
    target_init = jnp.asarray(target_init, jnp.float32)

    B = momentum.shape[0]
    momentum = momentum.reshape(B, -1, 2)
    n_mom = momentum.shape[1]
    n_pt = source_init.shape[1] + target_init.shape[1]
    tau = 1.0 / (n_T - 1)

    # Pad the point axis to a lane multiple.  Padded points carry zero momentum, so
    # they never influence real points; their rows are sliced off below.
    P = pl.cdiv(n_pt, 128) * 128
    C = _C_PAD

    # Generation-aware tiling: explicit VMEM limit, batch tile as a divisor of B.
    cap = _vmem_capacity_bytes()
    vmem_limit = int(cap * 3 // 4)            # 48 MiB on v7x, 96 MiB on v5e/v6e
    num_cores = 2 if cap <= (64 << 20) else 1  # 64 MiB VMEM => v7x-class (2 TCs)
    b_tile = _pick_b_tile(B, P, vmem_limit, num_cores)
    grid_len = B // b_tile                     # exact: b_tile divides B

    # ---- layout plumbing (wrapper / XLA side): coordinate-major only -------------
    pts = jnp.concatenate([source_init, target_init], axis=1)            # (B, n_pt, 2)
    mom = jnp.zeros((B, n_pt, 2), jnp.float32).at[:, :n_mom].set(momentum)

    x_cm = jnp.zeros((B, C, P), jnp.float32).at[:, :2, :n_pt].set(
        jnp.transpose(pts, (0, 2, 1)))
    p_cm = jnp.zeros((B, C, P), jnp.float32).at[:, :2, :n_pt].set(
        jnp.transpose(mom, (0, 2, 1)))
    neg_inv_sigma = (-1.0 / jnp.asarray(sigmaV2, jnp.float32)).reshape(1)

    kernel = _make_deform_kernel(tau)

    # Transcendental-bound: 2 * B * P^2 exps dominate.
    cost = pl.CostEstimate(
        flops=int(2 * B * (2 * C * P * P + 8 * P * P)),
        transcendentals=int(2 * B * P * P),
        bytes_accessed=int(3 * B * C * P * 4),
    )

    out_cm = pl.pallas_call(
        kernel,
        out_shape=jax.ShapeDtypeStruct((B, C, P), jnp.float32),
        grid=(grid_len,),
        in_specs=[
            pl.BlockSpec(memory_space=pltpu.MemorySpace.SMEM),           # -1/sigmaV2
            pl.BlockSpec((b_tile, C, P), lambda i: (i, 0, 0)),           # x coord-major
            pl.BlockSpec((b_tile, C, P), lambda i: (i, 0, 0)),           # p coord-major
        ],
        out_specs=pl.BlockSpec((b_tile, C, P), lambda i: (i, 0, 0)),
        compiler_params=pltpu.CompilerParams(
            dimension_semantics=("parallel",),
            vmem_limit_bytes=vmem_limit,
        ),
        cost_estimate=cost,
    )(neg_inv_sigma, x_cm, p_cm)

    # Drop coordinate/point padding, drop the momentum-carrying source rows, return
    # in the (B, n_out, 2) point-major layout of the PyTorch module.
    return jnp.transpose(out_cm[:, 0:2, n_mom:n_pt], (0, 2, 1))


def _reference(momentum, source_init, target_init, sigmaV2, n_T=3):
    """Pure-JAX transcription of the PyTorch forward, for verification."""
    tau = 1.0 / (n_T - 1)
    B, n_mom, _ = momentum.shape
    x = jnp.concatenate([source_init, target_init], axis=1)
    n_pt = x.shape[1]
    p = jnp.zeros((B, n_pt, 2), jnp.float32).at[:, :n_mom].set(momentum)

    def step(xc):
        d2 = jnp.sum((xc[:, :, None, :] - xc[:, None, :, :]) ** 2, axis=-1)
        w = jnp.exp(-d2 / sigmaV2)
        dp = jnp.einsum("bij,bjd->bid", w, p, precision=jax.lax.Precision.HIGHEST)
        return xc + dp * tau

    return step(step(x))[:, n_mom:]


if __name__ == "__main__":
    key = jax.random.PRNGKey(0)
    k1, k2, k3 = jax.random.split(key, 3)

    B, n_mom, n_src, n_tgt = 2, 8, 8, 8          # n_pt = 16, output has 8 points
    sigmaV2 = 0.5

    momentum = 0.1 * jax.random.normal(k1, (B, n_mom, 2), jnp.float32)
    source_init = jax.random.normal(k2, (B, n_src, 2), jnp.float32)
    target_init = jax.random.normal(k3, (B, n_tgt, 2), jnp.float32)

    out = single_curve_deform(momentum, source_init, target_init, sigmaV2, n_T=3)
    out = jax.block_until_ready(out)

    ref = _reference(momentum, source_init, target_init, sigmaV2, n_T=3)
    assert out.shape == (B, n_src + n_tgt - n_mom, 2), out.shape
    err = float(jnp.max(jnp.abs(out - ref)))
    assert jnp.allclose(out, ref, rtol=1e-4, atol=1e-4), err

    print("KERNEL_OK")
</pallas_src>

<mosaic_0001>
module attributes {stable_mosaic.version = 11 : i64} {
  func.func @kernel(%arg0: i32, %arg1: memref<1xf32, #tpu.memory_space<smem>>, %arg2: memref<1x8x128xf32, #tpu.memory_space<vmem>>, %arg3: memref<1x8x128xf32, #tpu.memory_space<vmem>>, %arg4: memref<1x8x128xf32, #tpu.memory_space<vmem>>) attributes {dimension_semantics = [#tpu.dimension_semantics<parallel>], iteration_bounds = array<i64: 2>, scalar_prefetch = 0 : i64, scratch_operands = 0 : i64, tpu.core_type = #tpu.core_type<tc>, window_params = [{transform_indices = @transform_0, window_bounds = array<i64: 1>}, {transform_indices = @transform_1, window_bounds = array<i64: 1, 8, 128>}, {transform_indices = @transform_2, window_bounds = array<i64: 1, 8, 128>}, {transform_indices = @transform_3, window_bounds = array<i64: 1, 8, 128>}]} {
    %c0 = arith.constant 0 : index
    %0 = memref.load %arg1[%c0] : memref<1xf32, #tpu.memory_space<smem>>
    %c0_0 = arith.constant 0 : index
    %c0_1 = arith.constant 0 : index
    %c0_2 = arith.constant 0 : index
    %1 = vector.load %arg2[%c0_0, %c0_1, %c0_2] : memref<1x8x128xf32, #tpu.memory_space<vmem>>, vector<1x8x128xf32>
    %c0_3 = arith.constant 0 : index
    %c0_4 = arith.constant 0 : index
    %c0_5 = arith.constant 0 : index
    %2 = vector.load %arg3[%c0_3, %c0_4, %c0_5] : memref<1x8x128xf32, #tpu.memory_space<vmem>>, vector<1x8x128xf32>
    %3 = tpu.transpose %1, [0, 2, 1] : vector<1x8x128xf32> -> vector<1x128x8xf32>
    %4 = vector.extract_strided_slice %3 {offsets = [0, 0, 0], sizes = [1, 128, 1], strides = [1, 1, 1]} : vector<1x128x8xf32> to vector<1x128x1xf32>
    %5 = vector.extract_strided_slice %1 {offsets = [0, 0, 0], sizes = [1, 1, 128], strides = [1, 1, 1]} : vector<1x8x128xf32> to vector<1x1x128xf32>
    %6 = vector.broadcast %4 : vector<1x128x1xf32> to vector<1x128x128xf32>
    %7 = vector.broadcast %5 : vector<1x1x128xf32> to vector<1x128x128xf32>
    %8 = arith.subf %6, %7 : vector<1x128x128xf32>
    %9 = vector.extract_strided_slice %3 {offsets = [0, 0, 1], sizes = [1, 128, 1], strides = [1, 1, 1]} : vector<1x128x8xf32> to vector<1x128x1xf32>
    %10 = vector.extract_strided_slice %1 {offsets = [0, 1, 0], sizes = [1, 1, 128], strides = [1, 1, 1]} : vector<1x8x128xf32> to vector<1x1x128xf32>
    %11 = vector.broadcast %9 : vector<1x128x1xf32> to vector<1x128x128xf32>
    %12 = vector.broadcast %10 : vector<1x1x128xf32> to vector<1x128x128xf32>
    %13 = arith.subf %11, %12 : vector<1x128x128xf32>
    %14 = arith.mulf %8, %8 : vector<1x128x128xf32>
    %15 = arith.mulf %13, %13 : vector<1x128x128xf32>
    %16 = arith.addf %14, %15 : vector<1x128x128xf32>
    %17 = vector.broadcast %0 : f32 to vector<1x128x128xf32>
    %18 = arith.mulf %16, %17 : vector<1x128x128xf32>
    %19 = math.exp %18 : vector<1x128x128xf32>
    "tpu.trace_start"() <{level = 10 : i32, message = "bcj,bji->bci"}> : () -> ()
    %cst = arith.constant dense<0.000000e+00> : vector<1x8x128xf32>
    %20 = tpu.matmul %2, %19, %cst {dimension_numbers = #tpu.dot_dimension_numbers<[2], [1], [1], [2], [0, 0, 0, 1, 1, 2], [0], [0]>} : vector<1x8x128xf32>, vector<1x128x128xf32>, vector<1x8x128xf32> -> vector<1x8x128xf32>
    "tpu.trace_stop"() : () -> ()
    %cst_6 = arith.constant 5.000000e-01 : f32
    %21 = vector.broadcast %cst_6 : f32 to vector<1x8x128xf32>
    %22 = arith.mulf %21, %20 : vector<1x8x128xf32>
    %23 = arith.addf %1, %22 : vector<1x8x128xf32>
    %24 = tpu.transpose %23, [0, 2, 1] : vector<1x8x128xf32> -> vector<1x128x8xf32>
    %25 = vector.extract_strided_slice %24 {offsets = [0, 0, 0], sizes = [1, 128, 1], strides = [1, 1, 1]} : vector<1x128x8xf32> to vector<1x128x1xf32>
    %26 = vector.extract_strided_slice %23 {offsets = [0, 0, 0], sizes = [1, 1, 128], strides = [1, 1, 1]} : vector<1x8x128xf32> to vector<1x1x128xf32>
    %27 = vector.broadcast %25 : vector<1x128x1xf32> to vector<1x128x128xf32>
    %28 = vector.broadcast %26 : vector<1x1x128xf32> to vector<1x128x128xf32>
    %29 = arith.subf %27, %28 : vector<1x128x128xf32>
    %30 = vector.extract_strided_slice %24 {offsets = [0, 0, 1], sizes = [1, 128, 1], strides = [1, 1, 1]} : vector<1x128x8xf32> to vector<1x128x1xf32>
    %31 = vector.extract_strided_slice %23 {offsets = [0, 1, 0], sizes = [1, 1, 128], strides = [1, 1, 1]} : vector<1x8x128xf32> to vector<1x1x128xf32>
    %32 = vector.broadcast %30 : vector<1x128x1xf32> to vector<1x128x128xf32>
    %33 = vector.broadcast %31 : vector<1x1x128xf32> to vector<1x128x128xf32>
    %34 = arith.subf %32, %33 : vector<1x128x128xf32>
    %35 = arith.mulf %29, %29 : vector<1x128x128xf32>
    %36 = arith.mulf %34, %34 : vector<1x128x128xf32>
    %37 = arith.addf %35, %36 : vector<1x128x128xf32>
    %38 = vector.broadcast %0 : f32 to vector<1x128x128xf32>
    %39 = arith.mulf %37, %38 : vector<1x128x128xf32>
    %40 = math.exp %39 : vector<1x128x128xf32>
    "tpu.trace_start"() <{level = 10 : i32, message = "bcj,bji->bci"}> : () -> ()
    %cst_7 = arith.constant dense<0.000000e+00> : vector<1x8x128xf32>
    %41 = tpu.matmul %2, %40, %cst_7 {dimension_numbers = #tpu.dot_dimension_numbers<[2], [1], [1], [2], [0, 0, 0, 1, 1, 2], [0], [0]>} : vector<1x8x128xf32>, vector<1x128x128xf32>, vector<1x8x128xf32> -> vector<1x8x128xf32>
    "tpu.trace_stop"() : () -> ()
    %cst_8 = arith.constant 5.000000e-01 : f32
    %42 = vector.broadcast %cst_8 : f32 to vector<1x8x128xf32>
    %43 = arith.mulf %42, %41 : vector<1x8x128xf32>
    %44 = arith.addf %23, %43 : vector<1x8x128xf32>
    %c0_9 = arith.constant 0 : index
    %c0_10 = arith.constant 0 : index
    %c0_11 = arith.constant 0 : index
    %45 = vector.load %arg4[%c0_9, %c0_10, %c0_11] : memref<1x8x128xf32, #tpu.memory_space<vmem>>, vector<1x8x128xf32>
    tpu.vector_store %arg4[%c0_9, %c0_10, %c0_11], %44 {strides = array<i32>} : memref<1x8x128xf32, #tpu.memory_space<vmem>>, vector<1x8x128xf32>,
    return
  }
  func.func @transform_0(%arg0: i32) -> i32 {
    %c0_i32 = arith.constant 0 : i32
    %c0_i32_0 = arith.constant 0 : i32
    return %c0_i32 : i32
  }
  func.func @transform_1(%arg0: i32) -> (i32, i32, i32) {
    %c0_i32 = arith.constant 0 : i32
    %c0_i32_0 = arith.constant 0 : i32
    %c0_i32_1 = arith.constant 0 : i32
    return %arg0, %c0_i32, %c0_i32_0 : i32, i32, i32
  }
  func.func @transform_2(%arg0: i32) -> (i32, i32, i32) {
    %c0_i32 = arith.constant 0 : i32
    %c0_i32_0 = arith.constant 0 : i32
    %c0_i32_1 = arith.constant 0 : i32
    return %arg0, %c0_i32, %c0_i32_0 : i32, i32, i32
  }
  func.func @transform_3(%arg0: i32) -> (i32, i32, i32) {
    %c0_i32 = arith.constant 0 : i32
    %c0_i32_0 = arith.constant 0 : i32
    %c0_i32_1 = arith.constant 0 : i32
    return %arg0, %c0_i32, %c0_i32_0 : i32, i32, i32
  }
}

</mosaic_0001>

<bundles_post_ra>
// kernel: tpu_custom_call.1
= control target key start
LH: loop header
LB: loop body
LE: loop exit
PB: predicated region body
PF: predicated region fallthrough
CT: control target
= control target key end

     0   :  { %s2034_s0 = inlined_call_operand.<no memory space> [shape: f32[1], index: 0, kind: input, shape index: {}]   ;;  %s2035_s1 = inlined_call_operand.hbm [shape: f32[2,8,128], index: 1, kind: input, shape index: {}]   ;;  %s2036_s2 = inlined_call_operand.hbm [shape: f32[2,8,128], index: 2, kind: input, shape index: {}]   ;;  %s2037_s3 = inlined_call_operand.hbm [shape: f32[2,8,128], index: 3, kind: output, shape index: {}]  }
   0x1   :  { %8 = sst [smem:[#allocation2]] %s2034_s0 }
   0x2   :  { %9 = vsyncpa [#allocation4], 0 }
   0x3   :  { %11 = vsyncpa [#allocation4 + $0x1], 0 }
   0x4   :  { %12 = vsyncpa [#allocation7], 0 }
   0x5   :  { %14 = vsyncpa [#allocation7 + $0x1], 0 }
   0x6   :  { %15 = vsyncpa [#allocation5], 0 }
   0x7   :  { %17 = vsyncpa [#allocation5 + $0x1], 0  ;;  %s1611_s14 = smov 0   ;;  %s1613_s15 = smov 0  }
   0x8   :  { %s1615_s16 = smov 0   ;;  %s1617_s17 = smov 0  }
   0x9 LB: > { %s1632_s0 = sadd.s32 4294967295, %s1578_s17   ;;  %s1104_s18 = sadd.s32 4294967294, %s1578_s17   ;;  %s1578_s17 = sphi %s1617_s17, %s2056_s17   ;;  %s1574_s16 = sphi %s1615_s16, %s2055_s16   ;;  %s1570_s15 = sphi %s1613_s15, %s2054_s15   ;;  %s1566_s14 = sphi %s1611_s14, %s2053_s14  }
   0xa   : > { %s1636_s19 = sadd.s32 1, %s1578_s17   ;;  %s51_s20 = sadd.s32 1, %s1574_s16 }
   0xb   : > { %s48_s21 = ssub.s32 %s1578_s17, %s1636_s19  ;;  %p58_p0 = scmp.ne.s32.totalorder %s1574_s16, %s1570_s15 }
   0xc   : > { %p49_p1 = scmp.eq.s32.totalorder %s48_s21, 0  ;;  %p59_p2 = scmp.eq.s32.totalorder %s1578_s17, 0 }
   0xd   : > { %p64_p3 = scmp.ne.s32.totalorder %s1570_s15, %s1566_s14  ;;  %p65_p4 = scmp.eq.s32.totalorder %s1632_s0, 0 }
   0xe   : > { %s1648_s22 = scalar_select %p49_p1, %s1574_s16, %s51_s20  }
   0xf   : > { %p1650_p5 = por %p59_p2, %p58_p0  ;;  %p1654_p6 = por %p65_p4, %p64_p3 }
  0x10   : > { %p114_p7 = scmp.eq.s32.totalorder %s1632_s0, 1  ;;  %p120_p8 = scmp.eq.s32.totalorder %s1104_s18, 1 }
  0x11   : > { %s2041_s24 = scalar_select %p1654_p6, 1, 0 }
  0x12   : > { %p1288_p10 = scmp.lt.s32.totalorder %s1578_s17, 2  ;;  %p1661_p11 = por %p114_p7, %p58_p0 }
  0x13   : > { %p1665_p12 = por %p120_p8, %p64_p3  ;;  %s1670_s27 = sand.u32 1, %s1574_s16  }
  0x14   : > { %s2042_s25 = scalar_select %p1661_p11, 1, 0 }
  0x15   : > { %s2043_s26 = scalar_select %p1665_p12, 1, 0 }
  0x16   : > { %s1108_s28 = sshll.u32 %s1578_s17, 7  ;;  %s1107_s29 = sshll.u32 %s1670_s27, 3 }
  0x17   : > { %s1679_s5 = scalar_lea.hbm %s2035_s1, %s1108_s28  ;;  %s147_s6 = scalar_lea.vmem [#allocation3], %s1107_s29 }
  0x18   : > { %s154_s7 = sshll.u32 %s147_s6, 4  ;;  %p1685_p13 = pnand %p1288_p10, %p1650_p5  ;;  %s1689_s7 = int_to_ptr.vmem [resolvable:$true] %s154_s7 }
  0x19   : > { %s144_s9 = scalar_lea.sflag [#allocation4], %s1670_s27  ;;  %s1448_s10 = scalar_lea.hbm %s1679_s5, 128 }
  0x1a   : > { %p1449_p2 = scmp.ne.s32.totalorder %s1679_s5, %s1448_s10  ;;  %p1450_p3 = pneg %p1685_p13 }
  0x1b   : > { %s1453_s13 = scalar_lea.hbm %s2035_s1, 256  ;;  %p1454_p5 = scmp.lt.u32.totalorder %s1679_s5, %s2035_s1 }
  0x1c   : > { %p1451_p4 = pnand %p1450_p3, %p1449_p2  ;;  %p1455_p8 = scmp.lt.u32.totalorder %s1453_s13, %s1448_s10 }
  0x1d   : > { %p1457_p9 = scmp.lt.u32.totalorder %s1448_s10, %s1679_s5 }
  0x1e   : > { %p1452_p7 = pneg %p1451_p4  ;;  %p1456_p10 = por %p1455_p8, %p1454_p5 }
  0x20   : > { %p1458_p0 = por %p1457_p9, %p1456_p10 }
  0x22   : > { %p1459_p1 = pnand %p1458_p0, %p1452_p7 }
  0x24   : > { %1462 = shalt.err (!%p1459_p1)
}
  0x25   : > { %s1463_s21 = scalar_lea.vmem %s1689_s7, 128  ;;  %s1580_s23 = smov [#allocation3]  }
  0x26   : > { %p1464_p2 = scmp.ne.s32.totalorder %s1689_s7, %s1463_s21  ;;  %s1468_s30 = sshll.u32 %s1580_s23, 4  ;;  %s1469_s30 = int_to_ptr.vmem [resolvable:$false] %s1468_s30 }
  0x27   : > { %s1470_s4 = scalar_lea.vmem %s1469_s30, 256  ;;  %p1471_p11 = scmp.lt.s32.totalorder %s1689_s7, %s1469_s30 }
  0x28   : > { %p1466_p4 = pnand %p1464_p2, %p1450_p3  ;;  %p1472_p5 = scmp.lt.s32.totalorder %s1470_s4, %s1463_s21 }
  0x2a   : > { %p1467_p12 = pneg %p1466_p4  ;;  %p1473_p8 = por %p1472_p5, %p1471_p11 }
  0x2c   : > { %p1474_p9 = pnand %p1473_p8, %p1467_p12 }
  0x2e   : > { %1477 = shalt.err (!%p1474_p9)
}
  0x2f   : > { %1280 = dma.hbm_to_vmem [thread:$0]  (!%p1685_p13), %s1679_s5, 128, %s1689_s7, %s144_s9  }
  0x30   : > { %p2045_p0 = scmp.lt.s32.totalorder %s1578_s17, 3  ;;  %p2046_p1 = scmp.ge.s32.totalorder %s1578_s17, 1 }
  0x31   : > { %s1732_s12 = scalar_lea.hbm %s2036_s2, %s1108_s28  ;;  %s165_s13 = scalar_lea.vmem [#allocation6], %s1107_s29 }
  0x32   : > { %p1723_p7 = pnand %p2046_p1, %p2045_p0  ;;  %s172_s18 = sshll.u32 %s165_s13, 4  ;;  %s173_s18 = int_to_ptr.vmem [resolvable:$true] %s172_s18 }
  0x33   : > { %s162_s5 = scalar_lea.sflag [#allocation7], %s1670_s27  ;;  %s1478_s7 = scalar_lea.hbm %s1732_s12, 128 }
  0x34   : > { %s2047_s6 = scalar_select %p1723_p7, 1, 0 }
  0x35   : > { %p1479_p11 = scmp.ne.s32.totalorder %s1732_s12, %s1478_s7  ;;  %s1483_s28 = scalar_lea.hbm %s2036_s2, 256 }
  0x36   : > { %p1484_p2 = scmp.lt.u32.totalorder %s1732_s12, %s2036_s2  ;;  %p1485_p4 = scmp.lt.u32.totalorder %s1483_s28, %s1478_s7 }
  0x37   : > { %p1481_p12 = pnand %p1479_p11, %p1450_p3  ;;  %p1487_p8 = scmp.lt.u32.totalorder %s1478_s7, %s1732_s12 }
  0x38   : > { %p1486_p5 = por %p1485_p4, %p1484_p2 }
  0x39   : > { %p1482_p10 = pneg %p1481_p12 }
  0x3a   : > { %p1488_p9 = por %p1487_p8, %p1486_p5 }
  0x3c   : > { %p1489_p0 = pnand %p1488_p9, %p1482_p10 }
  0x3e   : > { %1492 = shalt.err (!%p1489_p0)
}
  0x3f   : > { %s1493_s27 = scalar_lea.vmem %s173_s18, 128  ;;  %s1581_s29 = smov [#allocation6]  }
  0x40   : > { %p1494_p1 = scmp.ne.s32.totalorder %s173_s18, %s1493_s27  ;;  %s1498_s30 = sshll.u32 %s1581_s29, 4  ;;  %s1499_s30 = int_to_ptr.vmem [resolvable:$false] %s1498_s30 }
  0x41   : > { %s1500_s4 = scalar_lea.vmem %s1499_s30, 256  ;;  %p1501_p6 = scmp.lt.s32.totalorder %s173_s18, %s1499_s30 }
  0x42   : > { %p1496_p11 = pnand %p1494_p1, %p1450_p3  ;;  %p1502_p7 = scmp.lt.s32.totalorder %s1500_s4, %s1493_s27 }
  0x44   : > { %p1497_p12 = pneg %p1496_p11  ;;  %p1503_p2 = por %p1502_p7, %p1501_p6 }
  0x46   : > { %p1504_p4 = pnand %p1503_p2, %p1497_p12 }
  0x48   : > { %1507 = shalt.err (!%p1504_p4)
}
  0x49   : > { %1283 = dma.hbm_to_vmem [thread:$0]  (!%p1685_p13), %s1732_s12, 128, %s173_s18, %s162_s5  }
  0x4a   : > { %p2048_p10 = scmp.ne.s32.totalorder %s2047_s6, 0 }
  0x4b   : > { %s1759_s10 = sand.u32 (!%p2048_p10), 1, %s1570_s15   ;;  %p2049_p6 = scmp.ne.s32.totalorder (!%p2048_p10), %s2041_s24, 0 }
  0x4c   : > { %181 = sbr.rel (%p2048_p10) target bundleno = 1356 (0x54c), region = 32  ;;  %s1762_s11 = sshll.u32 (!%p2048_p10), %s1759_s10, 3 }
  0x4d   : > { %s184_s13 = scalar_lea.sflag (!%p2048_p10), [#allocation4], %s1759_s10  ;;  %s187_s7 = scalar_lea.vmem (!%p2048_p10), [#allocation3], %s1762_s11 }
  0x53   : > { %1553 = dma.done.wait (%p2049_p6), %s184_s13, 128  }
  0x54   : > { %1555 = vsyncadd (%p2049_p6), %s184_s13, 4294967168  ;;  %s193_s8 = scalar_lea.sflag [#allocation7], %s1759_s10  ;;  %s196_s6 = scalar_lea.vmem [#allocation6], %s1762_s11 }
  0x55   : > { %1557 = dma.done.wait (%p2049_p6), %s193_s8, 128  }
  0x56   : > { %1559 = vsyncadd (%p2049_p6), %s193_s8, 4294967168  ;;  %v1582_v0 = vmov 1   ;;  %v1777_v1 = vld [vmem:[%s187_s7] sm:$0xff]  ;;  %v1583_v2 = vmov 0   ;;  %v1584_v12 = vmov 0.0|0.0   ;;  %v339_v19 = vlaneseq  ;;  %s224_s24 = sld [smem:[#allocation2]] }
  0x57   : > { %1328 = vset.pattern.permute.xlu1 %v1582_v0  ;;  %227 = vxpose.xlu0.b32.start.end [1/1] (short) %v1777_v1, 128  ;;  %vm1585_vm0 = vmmov 0   ;;  %s1116_s12 = sshll.u32 %s1632_s0, 7  ;;  %s223_s18 = scalar_lea.vmem [#allocation8], %s1762_s11 }
  0x58   : > { %1223 = vmatprep.subr.bf16.mxu0 %v1584_v12  ;;  %1247 = vmatprep.subr.bf16.mxu1 %v1584_v12  ;;  %v1808_v20 = vshrl.u32 %v339_v19, 7  ;;  %s1011_s5 = sshll.u32 %s223_s18, 4  ;;  %s1990_s28 = scalar_lea.hbm %s2037_s3, %s1116_s12  ;;  %s1992_s5 = int_to_ptr.vmem [resolvable:$true] %s1011_s5 }
  0x59   : > { %s998_s21 = scalar_lea.sflag [#allocation5], %s1759_s10  ;;  %s1508_s23 = scalar_lea.vmem %s1992_s5, 128 }
  0x5a   : > { %v341_v21 = vsub.s32 0, %v1808_v20  ;;  %v425_v22 = vsub.s32 1, %v1808_v20  ;;  %p1509_p13 = scmp.ne.s32.totalorder %s1992_s5, %s1508_s23  ;;  %p2050_p3 = scmp.ne.s32.totalorder %s2042_s25, 0 }
  0x5b   : > { %s1587_s0 = smov [#allocation8]  }
  0x5c   : > { %v1816_v24 = vrot.slane %v1777_v1, %v341_v21  ;;  %v1821_v25 = vrot.slane %v1777_v1, %v425_v22  ;;  %v1828_v34 = vstv %s224_s24  ;;  %p1510_p7 = pnand %p1509_p13, %p2050_p3  ;;  %s1512_s27 = sshll.u32 %s1587_s0, 4  ;;  %s1513_s27 = int_to_ptr.vmem [resolvable:$false] %s1512_s27 }
  0x5d   : > { %s1514_s29 = scalar_lea.vmem %s1513_s27, 256  ;;  %p1515_p8 = scmp.lt.s32.totalorder %s1992_s5, %s1513_s27 }
  0x5e   : > { %p1511_p5 = pneg %p1510_p7  ;;  %p1516_p9 = scmp.lt.s32.totalorder %s1514_s29, %s1508_s23 }
  0x60   : > { %p1517_p0 = por %p1516_p9, %p1515_p8 }
  0x62   : > { %p1518_p1 = pnand %p1517_p0, %p1511_p5 }
  0x80   : > { %1327 = vset.pattern.permute.xlu0 %v1583_v2 }
  0xd7   : > { %v243_v3 = vpop.trf.xlu0 }
  0xd8   : > { %360 = vperm.xlu1 %1328, %v243_v3   ;;  %261 = vperm.xlu0 %1327, %v243_v3  }
  0xdb   : > { %v244_v4 = vpop.trf.xlu0 }
  0xdc   : > { %1329 = vset.pattern.permute.xlu1 %v1583_v2 }
  0xdd   : > { %266 = vperm.xlu1 %1329, %v244_v4  }
  0xdf   : > { %v245_v5 = vpop.trf.xlu0 }
  0xe1   : > { %1330 = vset.pattern.permute.xlu1 %v1582_v0 }
  0xe2   : > { %364 = vperm.xlu1 %1330, %v244_v4  }
  0xe3   : > { %v246_v6 = vpop.trf.xlu0 }
  0xe6   : > { %1331 = vset.pattern.permute.xlu1 %v1583_v2 }
  0xe7   : > { %271 = vperm.xlu1 %1331, %v245_v5   ;;  %v247_v7 = vpop.trf.xlu0 }
  0xeb   : > { %1332 = vset.pattern.permute.xlu1 %v1582_v0  ;;  %v248_v8 = vpop.trf.xlu0 }
  0xec   : > { %368 = vperm.xlu1 %1332, %v245_v5   ;;  %v1586_v5 = vmov 0.0  }
  0xed   : > { %1185 = vmatprep.mubr.msk.f32.mxu0 %vm1585_vm0, %v1586_v5  ;;  %1220 = vmatprep.mubr.msk.f32.mxu1 %vm1585_vm0, %v1586_v5 }
  0xef   : > { %v249_v9 = vpop.trf.xlu0 }
  0xf0   : > { %1333 = vset.pattern.permute.xlu1 %v1583_v2 }
  0xf1   : > { %276 = vperm.xlu1 %1333, %v246_v6  }
  0xf3   : > { %v250_v10 = vpop.trf.xlu0 }
  0xf5   : > { %1334 = vset.pattern.permute.xlu1 %v1582_v0 }
  0xf6   : > { %372 = vperm.xlu1 %1334, %v246_v6  }
  0xf7   : > { %v251_v11 = vpop.trf.xlu0 }
  0xfa   : > { %1335 = vset.pattern.permute.xlu1 %v1583_v2 }
  0xfb   : > { %281 = vperm.xlu1 %1335, %v247_v7   ;;  %v252_v13 = vpop.trf.xlu0 }
  0xff   : > { %1336 = vset.pattern.permute.xlu1 %v1582_v0  ;;  %v253_v14 = vpop.trf.xlu0 }
 0x100   : > { %376 = vperm.xlu1 %1336, %v247_v7  }
 0x103   : > { %v254_v15 = vpop.trf.xlu0 }
 0x104   : > { %1337 = vset.pattern.permute.xlu1 %v1583_v2 }
 0x105   : > { %286 = vperm.xlu1 %1337, %v248_v8  }
 0x107   : > { %v255_v16 = vpop.trf.xlu0 }
 0x109   : > { %1338 = vset.pattern.permute.xlu1 %v1582_v0 }
 0x10a   : > { %380 = vperm.xlu1 %1338, %v248_v8  }
 0x10b   : > { %v256_v17 = vpop.trf.xlu0 }
 0x10e   : > { %1339 = vset.pattern.permute.xlu1 %v1583_v2 }
 0x10f   : > { %291 = vperm.xlu1 %1339, %v249_v9   ;;  %v257_v18 = vpop.trf.xlu0 }
 0x110   : > { %331 = vperm.xlu0 %1327, %v257_v18  }
 0x113   : > { %1340 = vset.pattern.permute.xlu1 %v1582_v0  ;;  %v258_v23 = vpop.trf.xlu0 }
 0x114   : > { %384 = vperm.xlu1 %1340, %v249_v9   ;;  %1355 = vset.pattern.permute.xlu0 %v1582_v0 }
 0x115   : > { %416 = vperm.xlu0 %1355, %v257_v18  }
 0x118   : > { %1341 = vset.pattern.permute.xlu1 %v1583_v2 }
 0x119   : > { %296 = vperm.xlu1 %1341, %v250_v10   ;;  %1358 = vset.pattern.permute.xlu0 %v1583_v2 }
 0x11d   : > { %1342 = vset.pattern.permute.xlu1 %v1582_v0 }
 0x11e   : > { %388 = vperm.xlu1 %1342, %v250_v10  }
 0x122   : > { %1343 = vset.pattern.permute.xlu1 %v1583_v2 }
 0x123   : > { %301 = vperm.xlu1 %1343, %v251_v11  }
 0x127   : > { %1344 = vset.pattern.permute.xlu1 %v1582_v0 }
 0x128   : > { %392 = vperm.xlu1 %1344, %v251_v11  }
 0x12c   : > { %1345 = vset.pattern.permute.xlu1 %v1583_v2 }
 0x12d   : > { %306 = vperm.xlu1 %1345, %v252_v13  }
 0x131   : > { %1346 = vset.pattern.permute.xlu1 %v1582_v0 }
 0x132   : > { %396 = vperm.xlu1 %1346, %v252_v13  }
 0x136   : > { %1347 = vset.pattern.permute.xlu1 %v1583_v2 }
 0x137   : > { %311 = vperm.xlu1 %1347, %v253_v14  }
 0x13b   : > { %1348 = vset.pattern.permute.xlu1 %v1582_v0 }
 0x13c   : > { %400 = vperm.xlu1 %1348, %v253_v14  }
 0x140   : > { %1349 = vset.pattern.permute.xlu1 %v1583_v2 }
 0x141   : > { %316 = vperm.xlu1 %1349, %v254_v15  }
 0x145   : > { %1350 = vset.pattern.permute.xlu1 %v1582_v0 }
 0x146   : > { %404 = vperm.xlu1 %1350, %v254_v15  }
 0x14a   : > { %1351 = vset.pattern.permute.xlu1 %v1583_v2 }
 0x14b   : > { %321 = vperm.xlu1 %1351, %v255_v16  }
 0x14f   : > { %1352 = vset.pattern.permute.xlu1 %v1582_v0 }
 0x150   : > { %408 = vperm.xlu1 %1352, %v255_v16  }
 0x154   : > { %1353 = vset.pattern.permute.xlu1 %v1583_v2 }
 0x155   : > { %326 = vperm.xlu1 %1353, %v256_v17  }
 0x157   : > { %v361_v26 = vpop.permute.xlu1 %360  ;;  %v262_v27 = vpop.permute.xlu0 %261 }
 0x158   : > { %v427_v28 = vsub.f32 %v361_v26, %v1821_v25  ;;  %v343_v29 = vsub.f32 %v262_v27, %v1816_v24 }
 0x159   : > { %1354 = vset.pattern.permute.xlu1 %v1582_v0 }
 0x15a   : > { %412 = vperm.xlu1 %1354, %v256_v17   ;;  %v459_v30 = vmul.f32 %v427_v28, %v427_v28  ;;  %v443_v31 = vmul.f32 %v343_v29, %v343_v29 }
 0x15c   : > { %v267_v32 = vpop.permute.xlu1 %266  ;;  %v475_v33 = vadd.f32 %v459_v30, %v443_v31 }
 0x15d   : > { %v344_v35 = vsub.f32 %v267_v32, %v1816_v24 }
 0x15e   : > { %1356 = vset.pattern.permute.xlu1 %v1583_v2  ;;  %v492_v38 = vmul.f32 %v1828_v34, %v475_v33 }
 0x15f   : > { %336 = vperm.xlu1 %1356, %v258_v23   ;;  %v444_v39 = vmul.f32 %v344_v35, %v344_v35 }
 0x160   : > { %v508_v43 = vmul.f32 1.442695, %v492_v38 }
 0x161   : > { %v365_v36 = vpop.permute.xlu1 %364 }
 0x162   : > { %v428_v37 = vsub.f32 %v365_v36, %v1821_v25  ;;  %1384 = vpow2.f32 %v508_v43 }
 0x163   : > { %1357 = vset.pattern.permute.xlu1 %v1582_v0 }
 0x164   : > { %v460_v40 = vmul.f32 %v428_v37, %v428_v37  ;;  %420 = vperm.xlu1 %1357, %v258_v23  }
 0x166   : > { %v476_v41 = vadd.f32 %v460_v40, %v444_v39  ;;  %v272_v42 = vpop.permute.xlu1 %271 }
 0x167   : > { %v345_v48 = vsub.f32 %v272_v42, %v1816_v24 }
 0x168   : > { %v493_v44 = vmul.f32 %v1828_v34, %v476_v41 }
 0x169   : > { %v445_v51 = vmul.f32 %v345_v48, %v345_v48 }
 0x16a   : > { %v510_v45 = vmul.f32 1.442695, %v493_v44 }
 0x16b   : > { %v369_v46 = vpop.permute.xlu1 %368 }
 0x16c   : > { %1386 = vpow2.f32 %v510_v45  ;;  %v429_v47 = vsub.f32 %v369_v46, %v1821_v25  ;;  %v1385_v54 = vpop.eup %1384 }
 0x16e   : > { %v461_v49 = vmul.f32 %v429_v47, %v429_v47 }
 0x170   : > { %v277_v50 = vpop.permute.xlu1 %276  ;;  %v477_v52 = vadd.f32 %v461_v49, %v445_v51 }
 0x171   : > { %v346_v53 = vsub.f32 %v277_v50, %v1816_v24 }
 0x172   : > { %v494_v58 = vmul.f32 %v1828_v34, %v477_v52 }
 0x173   : > { %v446_v60 = vmul.f32 %v346_v53, %v346_v53 }
 0x174   : > { %v512_v3 = vmul.f32 1.442695, %v494_v58 }
 0x175   : > { %v373_v55 = vpop.permute.xlu1 %372 }
 0x176   : > { %v1387_v56 = vpop.eup %1386  ;;  %v430_v57 = vsub.f32 %v373_v55, %v1821_v25  ;;  %1388 = vpow2.f32 %v512_v3 }
 0x177   : > { %v1224_v59 = vpack.c.bf16 %v1387_v56, %v1385_v54 }
 0x178   : > { %v462_v61 = vmul.f32 %v430_v57, %v430_v57 }
 0x179   : > { %1225 = vmatpush3.bf16.msra.mxu0 %v1224_v59 }
 0x17a   : > { %v478_v62 = vadd.f32 %v462_v61, %v446_v60  ;;  %v282_v63 = vpop.permute.xlu1 %281  ;;  %1226 = vmatprep.subr.bf16.mxu0 %v1584_v12 }
 0x17b   : > { %v347_v9 = vsub.f32 %v282_v63, %v1816_v24 }
 0x17c   : > { %v495_v4 = vmul.f32 %v1828_v34, %v478_v62 }
 0x17d   : > { %v447_v13 = vmul.f32 %v347_v9, %v347_v9 }
 0x17e   : > { %v514_v6 = vmul.f32 1.442695, %v495_v4 }
 0x17f   : > { %v377_v7 = vpop.permute.xlu1 %376 }
 0x180   : > { %1390 = vpow2.f32 %v514_v6  ;;  %v431_v8 = vsub.f32 %v377_v7, %v1821_v25  ;;  %v1389_v16 = vpop.eup %1388 }
 0x182   : > { %v463_v10 = vmul.f32 %v431_v8, %v431_v8 }
 0x184   : > { %v287_v11 = vpop.permute.xlu1 %286  ;;  %v479_v14 = vadd.f32 %v463_v10, %v447_v13 }
 0x185   : > { %v348_v15 = vsub.f32 %v287_v11, %v1816_v24 }
 0x186   : > { %v496_v23 = vmul.f32 %v1828_v34, %v479_v14 }
 0x187   : > { %v448_v27 = vmul.f32 %v348_v15, %v348_v15 }
 0x188   : > { %v516_v31 = vmul.f32 1.442695, %v496_v23 }
 0x189   : > { %v381_v17 = vpop.permute.xlu1 %380 }
 0x18a   : > { %v1391_v18 = vpop.eup %1390  ;;  %v432_v19 = vsub.f32 %v381_v17, %v1821_v25  ;;  %1392 = vpow2.f32 %v516_v31 }
 0x18b   : > { %v1227_v26 = vpack.c.bf16 %v1391_v18, %v1389_v16 }
 0x18c   : > { %v464_v28 = vmul.f32 %v432_v19, %v432_v19 }
 0x18d   : > { %1228 = vmatpush3.bf16.msra.mxu0 %v1227_v26 }
 0x18e   : > { %v480_v29 = vadd.f32 %v464_v28, %v448_v27  ;;  %v292_v30 = vpop.permute.xlu1 %291  ;;  %1229 = vmatprep.subr.bf16.mxu0 %v1584_v12 }
 0x18f   : > { %v349_v37 = vsub.f32 %v292_v30, %v1816_v24 }
 0x190   : > { %v497_v32 = vmul.f32 %v1828_v34, %v480_v29 }
 0x191   : > { %v449_v40 = vmul.f32 %v349_v37, %v349_v37 }
 0x192   : > { %v518_v33 = vmul.f32 1.442695, %v497_v32 }
 0x193   : > { %v385_v35 = vpop.permute.xlu1 %384 }
 0x194   : > { %1394 = vpow2.f32 %v518_v33  ;;  %v433_v36 = vsub.f32 %v385_v35, %v1821_v25  ;;  %v1393_v43 = vpop.eup %1392 }
 0x196   : > { %v465_v38 = vmul.f32 %v433_v36, %v433_v36 }
 0x198   : > { %v297_v39 = vpop.permute.xlu1 %296  ;;  %v481_v41 = vadd.f32 %v465_v38, %v449_v40 }
 0x199   : > { %v350_v42 = vsub.f32 %v297_v39, %v1816_v24 }
 0x19a   : > { %v498_v47 = vmul.f32 %v1828_v34, %v481_v41 }
 0x19b   : > { %v450_v49 = vmul.f32 %v350_v42, %v350_v42 }
 0x19c   : > { %v520_v53 = vmul.f32 1.442695, %v498_v47 }
 0x19d   : > { %v389_v44 = vpop.permute.xlu1 %388 }
 0x19e   : > { %v1395_v45 = vpop.eup %1394  ;;  %v434_v46 = vsub.f32 %v389_v44, %v1821_v25  ;;  %1396 = vpow2.f32 %v520_v53 }
 0x19f   : > { %v1230_v48 = vpack.c.bf16 %v1395_v45, %v1393_v43  ;;  %v332_v45 = vpop.permute.xlu0 %331 }
 0x1a0   : > { %v466_v50 = vmul.f32 %v434_v46, %v434_v46 }
 0x1a1   : > { %1231 = vmatpush3.bf16.msra.mxu0 %v1230_v48 }
 0x1a2   : > { %v482_v51 = vadd.f32 %v466_v50, %v450_v49  ;;  %v302_v52 = vpop.permute.xlu1 %301  ;;  %1232 = vmatprep.subr.bf16.mxu0 %v1584_v12 }
 0x1a3   : > { %v351_v58 = vsub.f32 %v302_v52, %v1816_v24 }
 0x1a4   : > { %v499_v54 = vmul.f32 %v1828_v34, %v482_v51  ;;  %v417_v51 = vpop.permute.xlu0 %416 }
 0x1a5   : > { %v451_v61 = vmul.f32 %v351_v58, %v351_v58 }
 0x1a6   : > { %v522_v55 = vmul.f32 1.442695, %v499_v54 }
 0x1a7   : > { %v393_v56 = vpop.permute.xlu1 %392 }
 0x1a8   : > { %1398 = vpow2.f32 %v522_v55  ;;  %v435_v57 = vsub.f32 %v393_v56, %v1821_v25  ;;  %v1397_v3 = vpop.eup %1396  ;;  %v357_v55 = vsub.f32 %v332_v45, %v1816_v24  ;;  %v441_v56 = vsub.f32 %v417_v51, %v1821_v25 }
 0x1aa   : > { %v467_v59 = vmul.f32 %v435_v57, %v435_v57 }
 0x1ac   : > { %v307_v60 = vpop.permute.xlu1 %306  ;;  %v483_v62 = vadd.f32 %v467_v59, %v451_v61 }
 0x1ad   : > { %v352_v63 = vsub.f32 %v307_v60, %v1816_v24 }
 0x1ae   : > { %v500_v7 = vmul.f32 %v1828_v34, %v483_v62 }
 0x1af   : > { %v452_v9 = vmul.f32 %v352_v63, %v352_v63 }
 0x1b0   : > { %v524_v14 = vmul.f32 1.442695, %v500_v7 }
 0x1b1   : > { %v397_v4 = vpop.permute.xlu1 %396 }
 0x1b2   : > { %v1399_v5 = vpop.eup %1398  ;;  %v436_v6 = vsub.f32 %v397_v4, %v1821_v25  ;;  %1400 = vpow2.f32 %v524_v14  ;;  %v473_v4 = vmul.f32 %v441_v56, %v441_v56 }
 0x1b3   : > { %v1233_v8 = vpack.c.bf16 %v1399_v5, %v1397_v3  ;;  %v457_v3 = vmul.f32 %v357_v55, %v357_v55 }
 0x1b4   : > { %v468_v10 = vmul.f32 %v436_v6, %v436_v6 }
 0x1b5   : > { %1234 = vmatpush3.bf16.msra.mxu0 %v1233_v8 }
 0x1b6   : > { %v484_v11 = vadd.f32 %v468_v10, %v452_v9  ;;  %v312_v13 = vpop.permute.xlu1 %311  ;;  %1235 = vmatprep.subr.bf16.mxu0 %v1584_v12  ;;  %v489_v9 = vadd.f32 %v473_v4, %v457_v3 }
 0x1b7   : > { %v353_v19 = vsub.f32 %v312_v13, %v1816_v24 }
 0x1b8   : > { %v501_v15 = vmul.f32 %v1828_v34, %v484_v11 }
 0x1b9   : > { %v453_v27 = vmul.f32 %v353_v19, %v353_v19 }
 0x1ba   : > { %v526_v16 = vmul.f32 1.442695, %v501_v15  ;;  %v506_v15 = vmul.f32 %v1828_v34, %v489_v9 }
 0x1bb   : > { %v401_v17 = vpop.permute.xlu1 %400 }
 0x1bc   : > { %1402 = vpow2.f32 %v526_v16  ;;  %v437_v18 = vsub.f32 %v401_v17, %v1821_v25  ;;  %v1401_v30 = vpop.eup %1400  ;;  %v536_v19 = vmul.f32 1.442695, %v506_v15 }
 0x1be   : > { %v469_v23 = vmul.f32 %v437_v18, %v437_v18 }
 0x1c0   : > { %v317_v26 = vpop.permute.xlu1 %316  ;;  %v485_v28 = vadd.f32 %v469_v23, %v453_v27 }
 0x1c1   : > { %v354_v29 = vsub.f32 %v317_v26, %v1816_v24 }
 0x1c2   : > { %v502_v35 = vmul.f32 %v1828_v34, %v485_v28 }
 0x1c3   : > { %v454_v37 = vmul.f32 %v354_v29, %v354_v29 }
 0x1c4   : > { %v528_v41 = vmul.f32 1.442695, %v502_v35 }
 0x1c5   : > { %v405_v31 = vpop.permute.xlu1 %404 }
 0x1c6   : > { %v1403_v32 = vpop.eup %1402  ;;  %v438_v33 = vsub.f32 %v405_v31, %v1821_v25  ;;  %1404 = vpow2.f32 %v528_v41  ;;  %v1886_v31 = vld [vmem:[%s196_s6] sm:$0xff] }
 0x1c7   : > { %v1236_v36 = vpack.c.bf16 %v1403_v32, %v1401_v30 }
 0x1c8   : > { %v470_v38 = vmul.f32 %v438_v33, %v438_v33 }
 0x1c9   : > { %1237 = vmatpush3.bf16.msra.mxu0 %v1236_v36 }
 0x1ca   : > { %v486_v39 = vadd.f32 %v470_v38, %v454_v37  ;;  %v322_v40 = vpop.permute.xlu1 %321  ;;  %1238 = vmatprep.subr.bf16.mxu0 %v1584_v12 }
 0x1cb   : > { %v355_v47 = vsub.f32 %v322_v40, %v1816_v24 }
 0x1cc   : > { %v503_v42 = vmul.f32 %v1828_v34, %v486_v39 }
 0x1cd   : > { %v455_v50 = vmul.f32 %v355_v47, %v355_v47 }
 0x1ce   : > { %v530_v43 = vmul.f32 1.442695, %v503_v42 }
 0x1cf   : > { %v409_v44 = vpop.permute.xlu1 %408 }
 0x1d0   : > { %1406 = vpow2.f32 %v530_v43  ;;  %v439_v46 = vsub.f32 %v409_v44, %v1821_v25  ;;  %v1405_v54 = vpop.eup %1404 }
 0x1d2   : > { %v471_v48 = vmul.f32 %v439_v46, %v439_v46 }
 0x1d4   : > { %v327_v49 = vpop.permute.xlu1 %326  ;;  %v487_v52 = vadd.f32 %v471_v48, %v455_v50 }
 0x1d5   : > { %v356_v53 = vsub.f32 %v327_v49, %v1816_v24 }
 0x1d6   : > { %v504_v60 = vmul.f32 %v1828_v34, %v487_v52 }
 0x1d7   : > { %v456_v62 = vmul.f32 %v356_v53, %v356_v53 }
 0x1d8   : > { %v532_v7 = vmul.f32 1.442695, %v504_v60 }
 0x1d9   : > { %v413_v57 = vpop.permute.xlu1 %412 }
 0x1da   : > { %v1407_v58 = vpop.eup %1406  ;;  %v440_v59 = vsub.f32 %v413_v57, %v1821_v25  ;;  %1408 = vpow2.f32 %v532_v7 }
 0x1db   : > { %v1239_v61 = vpack.c.bf16 %v1407_v58, %v1405_v54 }
 0x1dc   : > { %v472_v63 = vmul.f32 %v440_v59, %v440_v59 }
 0x1dd   : > { %1240 = vmatpush3.bf16.msra.mxu0 %v1239_v61 }
 0x1de   : > { %v488_v5 = vadd.f32 %v472_v63, %v456_v62  ;;  %v337_v6 = vpop.permute.xlu1 %336  ;;  %1241 = vmatprep.subr.bf16.mxu0 %v1584_v12 }
 0x1df   : > { %v358_v11 = vsub.f32 %v337_v6, %v1816_v24 }
 0x1e0   : > { %v505_v8 = vmul.f32 %v1828_v34, %v488_v5 }
 0x1e1   : > { %v458_v16 = vmul.f32 %v358_v11, %v358_v11 }
 0x1e2   : > { %v534_v10 = vmul.f32 1.442695, %v505_v8 }
 0x1e3   : > { %v421_v13 = vpop.permute.xlu1 %420 }
 0x1e4   : > { %1410 = vpow2.f32 %v534_v10  ;;  %v442_v14 = vsub.f32 %v421_v13, %v1821_v25  ;;  %v1409_v27 = vpop.eup %1408 }
 0x1e5   : > { %1412 = vpow2.f32 %v536_v19 }
 0x1e6   : > { %v474_v17 = vmul.f32 %v442_v14, %v442_v14 }
 0x1e8   : > { %v490_v18 = vadd.f32 %v474_v17, %v458_v16 }
 0x1ea   : > { %v507_v23 = vmul.f32 %v1828_v34, %v490_v18 }
 0x1ec   : > { %v538_v26 = vmul.f32 1.442695, %v507_v23 }
 0x1ee   : > { %v1411_v28 = vpop.eup %1410  ;;  %1414 = vpow2.f32 %v538_v26 }
 0x1ef   : > { %v1242_v24 = vpack.c.bf16 %v1411_v28, %v1409_v27  ;;  %v1413_v29 = vpop.eup %1412 }
 0x1f1   : > { %1243 = vmatpush3.bf16.msra.mxu0 %v1242_v24 }
 0x1f2   : > { %1244 = vmatprep.subr.bf16.mxu0 %v1584_v12 }
 0x1f8   : > { %v1415_v25 = vpop.eup %1414 }
 0x1f9   : > { %v1245_v30 = vpack.c.bf16 %v1415_v25, %v1413_v29 }
 0x1fb   : > { %1246 = vmatpush3.bf16.msra.mxu0 %v1245_v30 }
 0x1fe   : > { %1186 = vmatmul.mubr.f32.vlgmr.msra.gmra.mrb[0].mxu0 %v1886_v31 }
 0x2d1   : > { %v606_v32 = vpop.f32.mrb[0].mxu0 }
 0x2d2   : > { %v610_v33 = vmul.f32 0.5, %v606_v32  ;;  %v1187_v35 = vpop.f32.mrb[1].mxu0 }
 0x2d4   : > { %v1890_v36 = vadd.f32 %v610_v33, %v1777_v1 }
 0x2d6   : > { %612 = vxpose.xlu1.b32.start.end [1/1] (short) %v1890_v36, 128  ;;  %v1921_v53 = vrot.slane %v1890_v36, %v425_v22  ;;  %v1926_v54 = vrot.slane %v1890_v36, %v341_v21 }
 0x356   : > { %v628_v37 = vpop.trf.xlu1 }
 0x357   : > { %646 = vperm.xlu0 %1358, %v628_v37  }
 0x35a   : > { %v629_v38 = vpop.trf.xlu1 }
 0x35b   : > { %1359 = vset.pattern.permute.xlu0 %v1582_v0 }
 0x35c   : > { %745 = vperm.xlu0 %1359, %v628_v37  }
 0x35e   : > { %v630_v39 = vpop.trf.xlu1 }
 0x360   : > { %1360 = vset.pattern.permute.xlu0 %v1583_v2 }
 0x361   : > { %651 = vperm.xlu0 %1360, %v629_v38  }
 0x362   : > { %v631_v40 = vpop.trf.xlu1 }
 0x363   : > { %757 = vperm.xlu1 %1357, %v631_v40  }
 0x365   : > { %1361 = vset.pattern.permute.xlu0 %v1582_v0 }
 0x366   : > { %749 = vperm.xlu0 %1361, %v629_v38   ;;  %v632_v41 = vpop.trf.xlu1 }
 0x36a   : > { %1362 = vset.pattern.permute.xlu0 %v1583_v2  ;;  %v633_v1 = vpop.trf.xlu1 }
 0x36b   : > { %656 = vperm.xlu0 %1362, %v630_v39  }
 0x36e   : > { %v634_v42 = vpop.trf.xlu1 }
 0x36f   : > { %1363 = vset.pattern.permute.xlu0 %v1582_v0 }
 0x370   : > { %753 = vperm.xlu0 %1363, %v630_v39  }
 0x372   : > { %v635_v43 = vpop.trf.xlu1 }
 0x374   : > { %1364 = vset.pattern.permute.xlu0 %v1583_v2 }
 0x375   : > { %661 = vperm.xlu0 %1364, %v631_v40  }
 0x376   : > { %v636_v44 = vpop.trf.xlu1 }
 0x379   : > { %666 = vperm.xlu0 %1364, %v632_v41  }
 0x37a   : > { %v637_v45 = vpop.trf.xlu1 }
 0x37d   : > { %1365 = vset.pattern.permute.xlu0 %v1582_v0 }
 0x37e   : > { %761 = vperm.xlu0 %1365, %v632_v41   ;;  %v638_v46 = vpop.trf.xlu1 }
 0x382   : > { %1366 = vset.pattern.permute.xlu0 %v1583_v2  ;;  %v639_v47 = vpop.trf.xlu1 }
 0x383   : > { %671 = vperm.xlu0 %1366, %v633_v1   ;;  %789 = vperm.xlu1 %1357, %v639_v47  }
 0x386   : > { %v640_v48 = vpop.trf.xlu1 }
 0x387   : > { %1367 = vset.pattern.permute.xlu0 %v1582_v0  ;;  %1379 = vset.pattern.permute.xlu1 %v1583_v2 }
 0x388   : > { %765 = vperm.xlu0 %1367, %v633_v1   ;;  %706 = vperm.xlu1 %1379, %v640_v48  }
 0x38a   : > { %v641_v49 = vpop.trf.xlu1 }
 0x38c   : > { %1368 = vset.pattern.permute.xlu0 %v1583_v2  ;;  %1380 = vset.pattern.permute.xlu1 %v1582_v0 }
 0x38d   : > { %676 = vperm.xlu0 %1368, %v634_v42   ;;  %793 = vperm.xlu1 %1380, %v640_v48  }
 0x38e   : > { %v642_v50 = vpop.trf.xlu1 }
 0x391   : > { %1369 = vset.pattern.permute.xlu0 %v1582_v0  ;;  %797 = vperm.xlu1 %1380, %v641_v49  }
 0x392   : > { %769 = vperm.xlu0 %1369, %v634_v42   ;;  %v643_v51 = vpop.trf.xlu1 }
 0x395   : > { %1381 = vset.pattern.permute.xlu1 %v1583_v2 }
 0x396   : > { %1370 = vset.pattern.permute.xlu0 %v1583_v2  ;;  %721 = vperm.xlu1 %1381, %v643_v51  }
 0x397   : > { %681 = vperm.xlu0 %1370, %v635_v43  }
 0x39a   : > { %1383 = vset.pattern.permute.xlu1 %v1582_v0 }
 0x39b   : > { %1371 = vset.pattern.permute.xlu0 %v1582_v0  ;;  %805 = vperm.xlu1 %1383, %v643_v51  }
 0x39c   : > { %773 = vperm.xlu0 %1371, %v635_v43  }
 0x3a0   : > { %1372 = vset.pattern.permute.xlu0 %v1583_v2 }
 0x3a1   : > { %686 = vperm.xlu0 %1372, %v636_v44  }
 0x3a5   : > { %1373 = vset.pattern.permute.xlu0 %v1582_v0 }
 0x3a6   : > { %777 = vperm.xlu0 %1373, %v636_v44  }
 0x3aa   : > { %1374 = vset.pattern.permute.xlu0 %v1583_v2 }
 0x3ab   : > { %691 = vperm.xlu0 %1374, %v637_v45  }
 0x3af   : > { %1375 = vset.pattern.permute.xlu0 %v1582_v0 }
 0x3b0   : > { %781 = vperm.xlu0 %1375, %v637_v45  }
 0x3b4   : > { %1376 = vset.pattern.permute.xlu0 %v1583_v2 }
 0x3b5   : > { %696 = vperm.xlu0 %1376, %v638_v46  }
 0x3b9   : > { %1377 = vset.pattern.permute.xlu0 %v1582_v0 }
 0x3ba   : > { %785 = vperm.xlu0 %1377, %v638_v46  }
 0x3be   : > { %1378 = vset.pattern.permute.xlu0 %v1583_v2 }
 0x3bf   : > { %701 = vperm.xlu0 %1378, %v639_v47  }
 0x3c3   : > { %711 = vperm.xlu0 %1378, %v641_v49  }
 0x3c7   : > { %716 = vperm.xlu0 %1378, %v642_v50  }
 0x3cb   : > { %1382 = vset.pattern.permute.xlu0 %v1582_v0 }
 0x3cc   : > { %801 = vperm.xlu0 %1382, %v642_v50  }
 0x3d6   : > { %v647_v52 = vpop.permute.xlu0 %646 }
 0x3d7   : > { %v728_v56 = vsub.f32 %v647_v52, %v1926_v54 }
 0x3d9   : > { %v828_v0 = vmul.f32 %v728_v56, %v728_v56 }
 0x3db   : > { %v746_v55 = vpop.permute.xlu0 %745 }
 0x3dc   : > { %v812_v2 = vsub.f32 %v746_v55, %v1921_v53 }
 0x3de   : > { %v844_v57 = vmul.f32 %v812_v2, %v812_v2 }
 0x3e0   : > { %v652_v58 = vpop.permute.xlu0 %651  ;;  %v860_v59 = vadd.f32 %v844_v57, %v828_v0 }
 0x3e1   : > { %v729_v60 = vsub.f32 %v652_v58, %v1926_v54 }
 0x3e2   : > { %v876_v62 = vmul.f32 %v860_v59, %v1828_v34  ;;  %v758_v9 = vpop.permute.xlu1 %757 }
 0x3e3   : > { %v829_v20 = vmul.f32 %v729_v60, %v729_v60  ;;  %v815_v14 = vsub.f32 %v758_v9, %v1921_v53 }
 0x3e4   : > { %v892_v4 = vmul.f32 1.442695, %v876_v62 }
 0x3e5   : > { %v750_v61 = vpop.permute.xlu0 %749  ;;  %v847_v19 = vmul.f32 %v815_v14, %v815_v14 }
 0x3e6   : > { %v813_v22 = vsub.f32 %v750_v61, %v1921_v53  ;;  %1416 = vpow2.f32 %v892_v4 }
 0x3e8   : > { %v845_v63 = vmul.f32 %v813_v22, %v813_v22 }
 0x3ea   : > { %v861_v21 = vadd.f32 %v845_v63, %v829_v20  ;;  %v657_v3 = vpop.permute.xlu0 %656 }
 0x3eb   : > { %v730_v7 = vsub.f32 %v657_v3, %v1926_v54 }
 0x3ec   : > { %v877_v5 = vmul.f32 %v861_v21, %v1828_v34 }
 0x3ed   : > { %v830_v11 = vmul.f32 %v730_v7, %v730_v7 }
 0x3ee   : > { %v894_v6 = vmul.f32 1.442695, %v877_v5 }
 0x3ef   : > { %v754_v8 = vpop.permute.xlu0 %753 }
 0x3f0   : > { %1418 = vpow2.f32 %v894_v6  ;;  %v814_v10 = vsub.f32 %v754_v8, %v1921_v53  ;;  %v1417_v27 = vpop.eup %1416 }
 0x3f2   : > { %v846_v13 = vmul.f32 %v814_v10, %v814_v10 }
 0x3f4   : > { %v862_v15 = vadd.f32 %v846_v13, %v830_v11  ;;  %v662_v16 = vpop.permute.xlu0 %661 }
 0x3f5   : > { %v731_v17 = vsub.f32 %v662_v16, %v1926_v54 }
 0x3f6   : > { %v878_v18 = vmul.f32 %v862_v15, %v1828_v34 }
 0x3f7   : > { %v831_v23 = vmul.f32 %v731_v17, %v731_v17 }
 0x3f8   : > { %v667_v26 = vpop.permute.xlu0 %666  ;;  %v896_v29 = vmul.f32 1.442695, %v878_v18 }
 0x3f9   : > { %v863_v28 = vadd.f32 %v847_v19, %v831_v23  ;;  %v732_v37 = vsub.f32 %v667_v26, %v1926_v54 }
 0x3fa   : > { %v1419_v24 = vpop.eup %1418  ;;  %1420 = vpow2.f32 %v896_v29 }
 0x3fb   : > { %v879_v25 = vmul.f32 %v863_v28, %v1828_v34  ;;  %v1248_v30 = vpack.c.bf16 %v1419_v24, %v1417_v27  ;;  %v832_v40 = vmul.f32 %v732_v37, %v732_v37 }
 0x3fd   : > { %v898_v32 = vmul.f32 1.442695, %v879_v25  ;;  %v762_v33 = vpop.permute.xlu0 %761  ;;  %1249 = vmatpush3.bf16.msra.mxu1 %v1248_v30 }
 0x3fe   : > { %v816_v35 = vsub.f32 %v762_v33, %v1921_v53  ;;  %1250 = vmatprep.subr.bf16.mxu1 %v1584_v12 }
 0x3ff   : > { %1422 = vpow2.f32 %v898_v32 }
 0x400   : > { %v848_v38 = vmul.f32 %v816_v35, %v816_v35 }
 0x402   : > { %v672_v39 = vpop.permute.xlu0 %671  ;;  %v864_v41 = vadd.f32 %v848_v38, %v832_v40  ;;  %v790_v7 = vpop.permute.xlu1 %789 }
 0x403   : > { %v733_v1 = vsub.f32 %v672_v39, %v1926_v54 }
 0x404   : > { %v1421_v43 = vpop.eup %1420  ;;  %v880_v46 = vmul.f32 %v864_v41, %v1828_v34 }
 0x405   : > { %v833_v47 = vmul.f32 %v733_v1, %v733_v1 }
 0x406   : > { %v900_v52 = vmul.f32 1.442695, %v880_v46 }
 0x407   : > { %v766_v42 = vpop.permute.xlu0 %765  ;;  %v707_v15 = vpop.permute.xlu1 %706 }
 0x408   : > { %v817_v44 = vsub.f32 %v766_v42, %v1921_v53  ;;  %1424 = vpow2.f32 %v900_v52  ;;  %v823_v52 = vsub.f32 %v790_v7, %v1921_v53 }
 0x409   : > { %v1423_v45 = vpop.eup %1422 }
 0x40a   : > { %v849_v48 = vmul.f32 %v817_v44, %v817_v44  ;;  %v1251_v49 = vpack.c.bf16 %v1423_v45, %v1421_v43 }
 0x40c   : > { %v865_v50 = vadd.f32 %v849_v48, %v833_v47  ;;  %v677_v51 = vpop.permute.xlu0 %676  ;;  %1252 = vmatpush3.bf16.msra.mxu1 %v1251_v49  ;;  %v794_v26 = vpop.permute.xlu1 %793  ;;  %v740_v47 = vsub.f32 %v707_v15, %v1926_v54 }
 0x40d   : > { %1253 = vmatprep.subr.bf16.mxu1 %v1584_v12  ;;  %v734_v58 = vsub.f32 %v677_v51, %v1926_v54  ;;  %v824_v42 = vsub.f32 %v794_v26, %v1921_v53 }
 0x40e   : > { %v881_v55 = vmul.f32 %v865_v50, %v1828_v34 }
 0x40f   : > { %v834_v60 = vmul.f32 %v734_v58, %v734_v58  ;;  %v856_v49 = vmul.f32 %v824_v42, %v824_v42 }
 0x410   : > { %v902_v2 = vmul.f32 1.442695, %v881_v55  ;;  %v798_v35 = vpop.permute.xlu1 %797  ;;  %v840_v55 = vmul.f32 %v740_v47, %v740_v47 }
 0x411   : > { %v770_v56 = vpop.permute.xlu0 %769 }
 0x412   : > { %1426 = vpow2.f32 %v902_v2  ;;  %v818_v57 = vsub.f32 %v770_v56, %v1921_v53  ;;  %v1425_v62 = vpop.eup %1424 }
 0x414   : > { %v850_v0 = vmul.f32 %v818_v57, %v818_v57 }
 0x415   : > { %v722_v43 = vpop.permute.xlu1 %721 }
 0x416   : > { %v682_v59 = vpop.permute.xlu0 %681  ;;  %v866_v61 = vadd.f32 %v850_v0, %v834_v60  ;;  %v872_v0 = vadd.f32 %v856_v49, %v840_v55 }
 0x417   : > { %v735_v22 = vsub.f32 %v682_v59, %v1926_v54  ;;  %v825_v59 = vsub.f32 %v798_v35, %v1921_v53 }
 0x418   : > { %v882_v3 = vmul.f32 %v866_v61, %v1828_v34  ;;  %v855_v61 = vmul.f32 %v823_v52, %v823_v52 }
 0x419   : > { %v835_v5 = vmul.f32 %v735_v22, %v735_v22  ;;  %v857_v7 = vmul.f32 %v825_v59, %v825_v59 }
 0x41a   : > { %v904_v10 = vmul.f32 1.442695, %v882_v3  ;;  %v806_v2 = vpop.permute.xlu1 %805 }
 0x41b   : > { %v774_v20 = vpop.permute.xlu0 %773  ;;  %v827_v22 = vsub.f32 %v806_v2, %v1921_v53 }
 0x41c   : > { %v1427_v63 = vpop.eup %1426  ;;  %v819_v21 = vsub.f32 %v774_v20, %v1921_v53  ;;  %1428 = vpow2.f32 %v904_v10 }
 0x41d   : > { %v1254_v4 = vpack.c.bf16 %v1427_v63, %v1425_v62 }
 0x41e   : > { %v851_v6 = vmul.f32 %v819_v21, %v819_v21  ;;  %v743_v21 = vsub.f32 %v722_v43, %v1926_v54 }
 0x41f   : > { %1255 = vmatpush3.bf16.msra.mxu1 %v1254_v4 }
 0x420   : > { %v867_v8 = vadd.f32 %v851_v6, %v835_v5  ;;  %v687_v9 = vpop.permute.xlu0 %686  ;;  %1256 = vmatprep.subr.bf16.mxu1 %v1584_v12  ;;  %v888_v6 = vmul.f32 %v872_v0, %v1828_v34  ;;  %v843_v15 = vmul.f32 %v743_v21, %v743_v21 }
 0x421   : > { %v736_v17 = vsub.f32 %v687_v9, %v1926_v54  ;;  %v859_v9 = vmul.f32 %v827_v22, %v827_v22 }
 0x422   : > { %v883_v11 = vmul.f32 %v867_v8, %v1828_v34 }
 0x423   : > { %v836_v23 = vmul.f32 %v736_v17, %v736_v17 }
 0x424   : > { %v906_v13 = vmul.f32 1.442695, %v883_v11 }
 0x425   : > { %v778_v14 = vpop.permute.xlu0 %777 }
 0x426   : > { %1430 = vpow2.f32 %v906_v13  ;;  %v820_v16 = vsub.f32 %v778_v14, %v1921_v53  ;;  %v1429_v24 = vpop.eup %1428 }
 0x428   : > { %v852_v18 = vmul.f32 %v820_v16, %v820_v16 }
 0x42a   : > { %v692_v19 = vpop.permute.xlu0 %691  ;;  %v868_v27 = vadd.f32 %v852_v18, %v836_v23  ;;  %v916_v18 = vmul.f32 1.442695, %v888_v6 }
 0x42b   : > { %v737_v28 = vsub.f32 %v692_v19, %v1926_v54  ;;  %v875_v19 = vadd.f32 %v859_v9, %v843_v15 }
 0x42c   : > { %v884_v32 = vmul.f32 %v868_v27, %v1828_v34 }
 0x42d   : > { %v837_v37 = vmul.f32 %v737_v28, %v737_v28 }
 0x42e   : > { %v908_v41 = vmul.f32 1.442695, %v884_v32 }
 0x42f   : > { %v782_v29 = vpop.permute.xlu0 %781 }
 0x430   : > { %v1431_v25 = vpop.eup %1430  ;;  %v821_v30 = vsub.f32 %v782_v29, %v1921_v53  ;;  %1432 = vpow2.f32 %v908_v41  ;;  %v891_v29 = vmul.f32 %v875_v19, %v1828_v34 }
 0x431   : > { %v1257_v33 = vpack.c.bf16 %v1431_v25, %v1429_v24 }
 0x432   : > { %v853_v38 = vmul.f32 %v821_v30, %v821_v30 }
 0x433   : > { %1258 = vmatpush3.bf16.msra.mxu1 %v1257_v33  ;;  %v922_v33 = vmul.f32 1.442695, %v891_v29 }
 0x434   : > { %v869_v39 = vadd.f32 %v853_v38, %v837_v37  ;;  %v697_v40 = vpop.permute.xlu0 %696  ;;  %1259 = vmatprep.subr.bf16.mxu1 %v1584_v12 }
 0x435   : > { %v738_v45 = vsub.f32 %v697_v40, %v1926_v54 }
 0x436   : > { %v885_v1 = vmul.f32 %v869_v39, %v1828_v34 }
 0x437   : > { %v838_v50 = vmul.f32 %v738_v45, %v738_v45 }
 0x438   : > { %v910_v44 = vmul.f32 1.442695, %v885_v1 }
 0x439   : > { %v786_v46 = vpop.permute.xlu0 %785 }
 0x43a   : > { %1434 = vpow2.f32 %v910_v44  ;;  %v822_v48 = vsub.f32 %v786_v46, %v1921_v53  ;;  %v1433_v63 = vpop.eup %1432 }
 0x43c   : > { %v854_v51 = vmul.f32 %v822_v48, %v822_v48 }
 0x43e   : > { %v870_v56 = vadd.f32 %v854_v51, %v838_v50  ;;  %v702_v57 = vpop.permute.xlu0 %701 }
 0x43f   : > { %v739_v58 = vsub.f32 %v702_v57, %v1926_v54 }
 0x440   : > { %v886_v60 = vmul.f32 %v870_v56, %v1828_v34 }
 0x441   : > { %v839_v62 = vmul.f32 %v739_v58, %v739_v58 }
 0x442   : > { %v712_v20 = vpop.permute.xlu0 %711  ;;  %v912_v8 = vmul.f32 1.442695, %v886_v60 }
 0x443   : > { %v871_v3 = vadd.f32 %v855_v61, %v839_v62  ;;  %v741_v4 = vsub.f32 %v712_v20, %v1926_v54 }
 0x444   : > { %v1435_v5 = vpop.eup %1434  ;;  %1436 = vpow2.f32 %v912_v8 }
 0x445   : > { %v887_v10 = vmul.f32 %v871_v3, %v1828_v34  ;;  %v841_v11 = vmul.f32 %v741_v4, %v741_v4  ;;  %v1260_v13 = vpack.c.bf16 %v1435_v5, %v1433_v63 }
 0x446   : > { %v717_v14 = vpop.permute.xlu0 %716 }
 0x447   : > { %v914_v16 = vmul.f32 1.442695, %v887_v10  ;;  %v873_v17 = vadd.f32 %v857_v7, %v841_v11  ;;  %1261 = vmatpush3.bf16.msra.mxu1 %v1260_v13  ;;  %v742_v26 = vsub.f32 %v717_v14, %v1926_v54 }
 0x448   : > { %1262 = vmatprep.subr.bf16.mxu1 %v1584_v12 }
 0x449   : > { %1438 = vpow2.f32 %v914_v16  ;;  %v889_v23 = vmul.f32 %v873_v17, %v1828_v34  ;;  %v842_v25 = vmul.f32 %v742_v26, %v742_v26 }
 0x44a   : > { %1440 = vpow2.f32 %v916_v18 }
 0x44b   : > { %v918_v27 = vmul.f32 1.442695, %v889_v23  ;;  %v802_v28 = vpop.permute.xlu0 %801 }
 0x44c   : > { %v826_v24 = vsub.f32 %v802_v28, %v1921_v53 }
 0x44d   : > { %1442 = vpow2.f32 %v918_v27 }
 0x44e   : > { %v858_v30 = vmul.f32 %v826_v24, %v826_v24  ;;  %v1437_v35 = vpop.eup %1436  ;;  %1444 = vpow2.f32 %v922_v33 }
 0x450   : > { %v874_v32 = vadd.f32 %v858_v30, %v842_v25 }
 0x452   : > { %v890_v37 = vmul.f32 %v874_v32, %v1828_v34 }
 0x453   : > { %v1439_v38 = vpop.eup %1438 }
 0x454   : > { %v920_v39 = vmul.f32 1.442695, %v890_v37  ;;  %v1263_v40 = vpack.c.bf16 %v1439_v38, %v1437_v35  ;;  %v1441_v54 = vpop.eup %1440 }
 0x456   : > { %1446 = vpow2.f32 %v920_v39  ;;  %1264 = vmatpush3.bf16.msra.mxu1 %v1263_v40 }
 0x457   : > { %v1443_v53 = vpop.eup %1442  ;;  %1265 = vmatprep.subr.bf16.mxu1 %v1584_v12 }
 0x458   : > { %v1266_v41 = vpack.c.bf16 %v1443_v53, %v1441_v54  ;;  %v1445_v1 = vpop.eup %1444 }
 0x45a   : > { %1267 = vmatpush3.bf16.msra.mxu1 %v1266_v41 }
 0x45b   : > { %1268 = vmatprep.subr.bf16.mxu1 %v1584_v12 }
 0x460   : > { %v1447_v42 = vpop.eup %1446 }
 0x461   : > { %v1269_v34 = vpack.c.bf16 %v1445_v1, %v1447_v42 }
 0x463   : > { %1270 = vmatpush3.bf16.msra.mxu1 %v1269_v34 }
 0x466   : > { %1221 = vmatmul.mubr.f32.vlgmr.msra.gmra.mrb[0].mxu1 %v1886_v31 }
 0x539   : > { %v990_v43 = vpop.f32.mrb[0].mxu1 }
 0x53a   : > { %v994_v44 = vmul.f32 0.5, %v990_v43  ;;  %v1222_v45 = vpop.f32.mrb[1].mxu1 }
 0x53c   : > { %v995_v46 = vadd.f32 %v994_v44, %v1890_v36 }
 0x53e   : > { %996 = vst [vmem:[%s223_s18] sm:$0xff] %v995_v46 }
 0x53f   : > { %1521 = shalt.err (!%p1518_p1)
}
 0x540   : > { %s1522_s30 = scalar_lea.hbm %s1990_s28, 128  ;;  %s1526_s11 = scalar_lea.hbm %s2037_s3, 256 }
 0x541   : > { %p1523_p11 = scmp.ne.s32.totalorder %s1990_s28, %s1522_s30  ;;  %p1527_p4 = scmp.lt.u32.totalorder %s1990_s28, %s2037_s3 }
 0x542   : > { %p1528_p10 = scmp.lt.u32.totalorder %s1526_s11, %s1522_s30  ;;  %p1530_p13 = scmp.lt.u32.totalorder %s1522_s30, %s1990_s28 }
 0x543   : > { %p1524_p12 = pnand %p1523_p11, %p2050_p3 }
 0x544   : > { %p1529_p6 = por %p1528_p10, %p1527_p4 }
 0x545   : > { %p1525_p2 = pneg %p1524_p12 }
 0x546   : > { %p1531_p7 = por %p1530_p13, %p1529_p6 }
 0x548   : > { %p1532_p5 = pnand %p1531_p7, %p1525_p2 }
 0x54a   : > { %1535 = shalt.err (!%p1532_p5)
}
 0x54b   : > { %1275 = dma.vmem_to_hbm [thread:$0]  (%p2050_p3), %s1992_s5, 128, %s1990_s28, %s998_s21  }
 0x54c PF: > { %s1023_s8 = sand.u32 1, %s1566_s14   ;;  %p2051_p8 = scmp.ne.s32.totalorder %s2043_s26, 0 }
 0x54d   : > { %p2052_p9 = scmp.ge.s32.totalorder %s1578_s17, 2  ;;  %s1024_s6 = scalar_lea.sflag [#allocation5], %s1023_s8 }
 0x54f   : > { %p1285_p0 = pnand %p2052_p9, %p2051_p8 }
 0x551   : > { %1561 = dma.done.wait (!%p1285_p0), %s1024_s6, 128  }
 0x552   : > { %1563 = vsyncadd (!%p1285_p0), %s1024_s6, 4294967168  ;;  %p20_p1 = scmp.ge.s32.totalorder %s1636_s19, 4   ;;  %s2053_s14 = smov %s1570_s15 }
 0x553   : > { %s2054_s15 = smov %s1574_s16  ;;  %s2055_s16 = smov %s1648_s22 }
 0x554   : > { %s2056_s17 = smov %s1636_s19  ;;  %22 = sbr.rel (!%p20_p1) target bundleno = 9 (0x9), region = 90 }
 0x55b   :  { %1029 = vsyncpa [#allocation4], 1 }
 0x55c   :  { %1031 = vsyncpa [#allocation4 + $0x1], 1 }
 0x55d   :  { %1032 = vsyncpa [#allocation7], 1 }
 0x55e   :  { %1034 = vsyncpa [#allocation7 + $0x1], 1 }
 0x55f   :  { %1035 = vsyncpa [#allocation5], 1 }
 0x560   :  { %1037 = vsyncpa [#allocation5 + $0x1], 1 }

</bundles_post_ra>
